<compile_context>
chip_gen: v7x
topology: tpu7x:2x2x1
jax: 0.10.0
libtpu: 0.0.40
codegen_flags: <defaults>
</compile_context>

<pallas_src>
import jax
import jax.numpy as jnp
from jax.experimental import pallas as pl
from jax.experimental.pallas import tpu as pltpu


def _detr_postprocess_kernel(wh_ref, boxes_ref, out_ref):
    """One (TB, N*4) lane-dense tile of batch rows per grid step.

    wh_ref   : (TB, 2)   f32 VMEM; column 0 = scale_w * W, column 1 = scale_h * H
    boxes_ref: (TB, N*4) native-dtype VMEM; flattened xyxy boxes
    out_ref  : (TB, N*4) VMEM
    """
    boxes = boxes_ref[...].astype(jnp.float32)  # in-kernel upcast (free VPU slack)

    # Even flattened lanes are x coords (scale by w*), odd lanes are y (scale by h*).
    parity = jax.lax.broadcasted_iota(jnp.int32, boxes.shape, dimension=1) & 1
    w_bcast = jnp.broadcast_to(wh_ref[:, 0:1], boxes.shape)
    h_bcast = jnp.broadcast_to(wh_ref[:, 1:2], boxes.shape)
    scale = jnp.where(parity == 0, w_bcast, h_bcast)

    out_ref[...] = (boxes * scale).astype(out_ref.dtype)


def _choose_tile_rows(B, n4, in_itemsize, out_itemsize):
    """Pick the number of batch rows per grid step."""
    row_bytes = n4 * (in_itemsize + out_itemsize)
    total_bytes = B * row_bytes

    # Small problems: a single whole-array block.  Dispatch / pipeline prologue
    # dominates here; block dims equal the full array dims so the (8,128)
    # tiling rule is satisfied for any B / N.
    if total_bytes <= (1 << 20):
        return B

    # Large problems: multi-row tiles.  Keep two double-buffered (in + out)
    # blocks well under the smallest scoped-VMEM default (16 MiB on v5e; also
    # conservative for v7x's 64 MiB VMEM), use a multiple of 8 sublanes, and
    # leave >= 2 grid steps so the batch axis can shard across v7x's 2 TCs.
    budget = 12 * 1024 * 1024
    tb = budget // (2 * row_bytes)
    tb = min(tb, pl.cdiv(B, 2))
    tb = max(8, (tb // 8) * 8)
    return min(tb, B)


def detr_postprocess(norm_boxes, scales, *, height, width):
    """Pallas wrapper for DetrPostprocessor.forward.

    norm_boxes: (B, N, 4) float, last dim = (x0, y0, x1, y1) normalized coords
    scales:     (B, 2)    float, ordered (scale_h, scale_w) like `_image_size = [h, w]`
    returns:    (B, N, 4) in norm_boxes.dtype
    """
    B, N, C = norm_boxes.shape
    assert C == 4
    assert scales.shape == (B, 2)
    n4 = N * 4
    out_dtype = norm_boxes.dtype

    # Tiny (B, 2) precompute: flip(scales * [H, W]) -> [scale_w * W, scale_h * H].
    image_size = jnp.asarray([height, width], dtype=jnp.float32)
    wh = jnp.flip(scales.astype(jnp.float32) * image_size, axis=-1)  # (B, 2)

    # Free, contiguous reshape to the lane-dense 2D view; input stays native dtype.
    boxes_flat = norm_boxes.reshape(B, n4)

    in_itemsize = jnp.dtype(norm_boxes.dtype).itemsize
    out_itemsize = jnp.dtype(out_dtype).itemsize
    TB = _choose_tile_rows(B, n4, in_itemsize, out_itemsize)
    grid_steps = pl.cdiv(B, TB)

    cost = pl.CostEstimate(
        flops=B * n4,
        transcendentals=0,
        bytes_accessed=B * n4 * (in_itemsize + out_itemsize) + B * 2 * 4,
    )

    out_flat = pl.pallas_call(
        _detr_postprocess_kernel,
        out_shape=jax.ShapeDtypeStruct((B, n4), out_dtype),
        grid=(grid_steps,),
        in_specs=[
            pl.BlockSpec((TB, 2), lambda i: (i, 0)),    # per-tile [w*, h*] columns
            pl.BlockSpec((TB, n4), lambda i: (i, 0)),   # lane-dense box rows
        ],
        out_specs=pl.BlockSpec((TB, n4), lambda i: (i, 0)),
        compiler_params=pltpu.CompilerParams(
            dimension_semantics=("parallel",),  # shards the batch axis across TCs on v7x
        ),
        cost_estimate=cost,
    )(wh, boxes_flat)

    return out_flat.reshape(B, N, 4)


def _reference(norm_boxes, scales, *, height, width):
    """Pure-JAX reference mirroring the PyTorch forward."""
    image_size = jnp.array([height, width], dtype=jnp.float32)
    xyxy = jnp.flip(scales.astype(jnp.float32) * image_size, axis=-1)  # (B, 2) = [w*, h*]
    xyxy = jnp.tile(xyxy[:, None, :], (1, norm_boxes.shape[1], 2))     # (B, N, 4)
    return (norm_boxes.astype(jnp.float32) * xyxy).astype(norm_boxes.dtype)


if __name__ == "__main__":
    HEIGHT, WIDTH = 480, 640
    B, N = 2, 8

    key = jax.random.PRNGKey(0)
    k1, k2 = jax.random.split(key)
    norm_boxes = jax.random.uniform(k1, (B, N, 4), dtype=jnp.float32)
    scales = jax.random.uniform(k2, (B, 2), dtype=jnp.float32, minval=0.5, maxval=1.5)

    out = detr_postprocess(norm_boxes, scales, height=HEIGHT, width=WIDTH)
    out = jax.block_until_ready(out)

    ref = _reference(norm_boxes, scales, height=HEIGHT, width=WIDTH)
    assert out.shape == (B, N, 4)
    assert out.dtype == norm_boxes.dtype
    assert jnp.allclose(out, ref, rtol=1e-6, atol=1e-6), "mismatch vs reference"

    print("KERNEL_OK")
</pallas_src>

<mosaic_0001>
module attributes {stable_mosaic.version = 11 : i64} {
  func.func @_detr_postprocess_kernel(%arg0: i32, %arg1: memref<2x2xf32, #tpu.memory_space<vmem>>, %arg2: memref<2x32xf32, #tpu.memory_space<vmem>>, %arg3: memref<2x32xf32, #tpu.memory_space<vmem>>) attributes {dimension_semantics = [#tpu.dimension_semantics<parallel>], iteration_bounds = array<i64: 1>, scalar_prefetch = 0 : i64, scratch_operands = 0 : i64, tpu.core_type = #tpu.core_type<tc>, window_params = [{transform_indices = @transform_0, window_bounds = array<i64: 2, 2>}, {transform_indices = @transform_1, window_bounds = array<i64: 2, 32>}, {transform_indices = @transform_2, window_bounds = array<i64: 2, 32>}]} {
    %c0 = arith.constant 0 : index
    %c0_0 = arith.constant 0 : index
    %0 = vector.load %arg2[%c0, %c0_0] : memref<2x32xf32, #tpu.memory_space<vmem>>, vector<2x32xf32>
    %1 = tpu.iota {dimensions = array<i32: 1>} : vector<2x32xi32>
    %c1_i32 = arith.constant 1 : i32
    %2 = vector.broadcast %c1_i32 : i32 to vector<2x32xi32>
    %3 = arith.andi %1, %2 : vector<2x32xi32>
    %c0_1 = arith.constant 0 : index
    %c0_2 = arith.constant 0 : index
    %4 = vector.load %arg1[%c0_1, %c0_2] : memref<2x2xf32, #tpu.memory_space<vmem>>, vector<2x1xf32>
    %5 = vector.shape_cast %4 : vector<2x1xf32> to vector<2x1xf32>
    %6 = vector.broadcast %5 : vector<2x1xf32> to vector<2x32xf32>
    %c0_3 = arith.constant 0 : index
    %c1 = arith.constant 1 : index
    %7 = vector.load %arg1[%c0_3, %c1] : memref<2x2xf32, #tpu.memory_space<vmem>>, vector<2x1xf32>
    %8 = vector.shape_cast %7 : vector<2x1xf32> to vector<2x1xf32>
    %9 = vector.broadcast %8 : vector<2x1xf32> to vector<2x32xf32>
    %c0_i32 = arith.constant 0 : i32
    %10 = vector.broadcast %c0_i32 : i32 to vector<2x32xi32>
    %11 = arith.cmpi eq, %3, %10 : vector<2x32xi32>
    %12 = arith.select %11, %6, %9 : vector<2x32xi1>, vector<2x32xf32>
    %13 = arith.mulf %0, %12 : vector<2x32xf32>
    %c0_4 = arith.constant 0 : index
    %c0_5 = arith.constant 0 : index
    %14 = vector.load %arg3[%c0_4, %c0_5] : memref<2x32xf32, #tpu.memory_space<vmem>>, vector<2x32xf32>
    tpu.vector_store %arg3[%c0_4, %c0_5], %13 {strides = array<i32>} : memref<2x32xf32, #tpu.memory_space<vmem>>, vector<2x32xf32>,
    return
  }
  func.func @transform_0(%arg0: i32) -> (i32, i32) {
    %c0_i32 = arith.constant 0 : i32
    %c0_i32_0 = arith.constant 0 : i32
    return %arg0, %c0_i32 : i32, i32
  }
  func.func @transform_1(%arg0: i32) -> (i32, i32) {
    %c0_i32 = arith.constant 0 : i32
    %c0_i32_0 = arith.constant 0 : i32
    return %arg0, %c0_i32 : i32, i32
  }
  func.func @transform_2(%arg0: i32) -> (i32, i32) {
    %c0_i32 = arith.constant 0 : i32
    %c0_i32_0 = arith.constant 0 : i32
    return %arg0, %c0_i32 : i32, i32
  }
}

</mosaic_0001>

<bundles_post_ra>
// kernel: tpu_custom_call.1
= control target key start
LH: loop header
LB: loop body
LE: loop exit
PB: predicated region body
PF: predicated region fallthrough
CT: control target
= control target key end

     0   :  { %7 = vsyncpa [#allocation3], 0  ;;  %s158_s0 = inlined_call_operand.hbm [shape: f32[2,2], index: 0, kind: input, shape index: {}]   ;;  %s159_s1 = inlined_call_operand.vmem [shape: f32[2,32], index: 1, kind: input, shape index: {}]   ;;  %s160_s2 = inlined_call_operand.hbm [shape: f32[2,32], index: 2, kind: output, shape index: {}]  }
   0x1   :  { %8 = vsyncpa [#allocation4], 0  ;;  %s112_s9 = smov [#allocation2]   ;;  %s64_s13 = scalar_lea.hbm %s158_s0, 32 }
   0x2   :  { %s15_s10 = sshll.u32 %s112_s9, 4  ;;  %p65_p0 = scmp.ne.s32.totalorder %s158_s0, %s64_s13  ;;  %s16_s10 = int_to_ptr.vmem [resolvable:$true] %s15_s10 }
   0x3   :  { %p68_p1 = scmp.lt.u32.totalorder %s64_s13, %s158_s0 }
   0x5   :  { %p70_p2 = pnand %p68_p1, %p65_p0 }
   0x7   :  { %73 = shalt.err (!%p70_p2)
}
   0x8   :  { %s74_s18 = scalar_lea.vmem %s16_s10, 32  ;;  %p79_p4 = scmp.lt.s32.totalorder %s16_s10, %s16_s10 }
   0x9   :  { %p75_p3 = scmp.ne.s32.totalorder %s16_s10, %s74_s18  ;;  %p80_p5 = scmp.lt.s32.totalorder %s74_s18, %s74_s18 }
   0xb   :  { %p81_p6 = por %p80_p5, %p79_p4 }
   0xd   :  { %p82_p7 = pnand %p81_p6, %p75_p3 }
   0xf   :  { %85 = shalt.err (!%p82_p7)
}
  0x10   :  { %18 = dma.hbm_to_vmem [thread:$0]  %s158_s0, 32, %s16_s10, [#allocation3]  }
  0x11   :  { %108 = dma.done.wait [#allocation3], 32  }
  0x12   :  { %109 = vsyncadd [#allocation3], 4294967264  ;;  %v113_v0 = vmov 0   ;;  %v28_v1 = vld [vmem:[#allocation2] sm:$0x3]  ;;  %v114_v2 = vmov 1   ;;  %v25_v3 = vlaneseq }
  0x13   :  { %62 = vset.pattern.permute.xlu0 %v113_v0  ;;  %v24_v7 = vld [vmem:[%s159_s1] sm:$0x3]  ;;  %s115_s23 = smov [#allocation5]   ;;  %vm41_vm1 = vcmask 254976  }
  0x14   :  { %31 = vperm.xlu0 %62, %v28_v1   ;;  %v26_v4 = vand.u32 127, %v25_v3  ;;  %s49_s0 = sshll.u32 %s115_s23, 4  ;;  %s50_s0 = int_to_ptr.vmem [resolvable:$true] %s49_s0 }
  0x15   :  { %s86_s24 = scalar_lea.vmem %s50_s0, 32  ;;  %p91_p9 = scmp.lt.s32.totalorder %s50_s0, %s50_s0 }
  0x16   :  { %v27_v5 = vand.u32 1, %v26_v4  ;;  %p87_p8 = scmp.ne.s32.totalorder %s50_s0, %s86_s24  ;;  %p92_p10 = scmp.lt.s32.totalorder %s86_s24, %s86_s24 }
  0x18   :  { %63 = vset.pattern.permute.xlu0 %v114_v2  ;;  %vm38_vm0 = vcmp.eq.s32.totalorder %v27_v5, 0  ;;  %p93_p11 = por %p92_p10, %p91_p9 }
  0x19   :  { %35 = vperm.xlu0 %63, %v28_v1  }
  0x1a   :  { %p94_p12 = pnand %p93_p11, %p87_p8 }
  0x93   :  { %v32_v6 = vpop.permute.xlu0 %31 }
  0x98   :  { %v36_v8 = vpop.permute.xlu0 %35 }
  0x99   :  { %v39_v9 = vsel %vm38_vm0, %v32_v6, %v36_v8 }
  0x9a   :  { %v40_v10 = vmul.f32 %v39_v9, %v24_v7 }
  0x9c   :  { %42 = vst.msk [vmem:[#allocation5] sm:$0x3] %vm41_vm1, %v40_v10 }
  0x9d   :  { %97 = shalt.err (!%p94_p12)
}
  0x9e   :  { %s98_s27 = scalar_lea.hbm %s160_s2, 32 }
  0x9f   :  { %p99_p13 = scmp.ne.s32.totalorder %s160_s2, %s98_s27  ;;  %p102_p0 = scmp.lt.u32.totalorder %s98_s27, %s160_s2 }
  0xa1   :  { %p104_p1 = pnand %p102_p0, %p99_p13 }
  0xa3   :  { %107 = shalt.err (!%p104_p1)
}
  0xa4   :  { %52 = dma.vmem_to_hbm [thread:$0]  %s50_s0, 32, %s160_s2, [#allocation4]  }
  0xa5   :  { %110 = dma.done.wait [#allocation4], 32  }
  0xa6   :  { %111 = vsyncadd [#allocation4], 4294967264 }
  0xa7   :  { %56 = vsyncpa [#allocation3], 1 }
  0xa8   :  { %57 = vsyncpa [#allocation4], 1 }

</bundles_post_ra>
